<compile_context>
chip_gen: v7x
topology: tpu7x:2x2x1
jax: 0.10.0
libtpu: 0.0.40
codegen_flags: <defaults>
</compile_context>

<pallas_src>
import jax
import jax.numpy as jnp
from jax import lax
from jax.experimental import pallas as pl
from jax.experimental.pallas import tpu as pltpu


def _patch_embed_kernel(x_ref, wt_ref, b_ref, o_ref):
    # x_ref : (tm, K)        im2col'd patch rows (K = in_ch * p * p)
    # wt_ref: (K, F)         transposed/flattened conv weight
    # b_ref : (1, F)         conv bias
    # o_ref : (tm, F)        output rows (already in final channels-last order)
    y = jnp.dot(x_ref[...], wt_ref[...], preferred_element_type=jnp.float32)
    o_ref[...] = (y + b_ref[...]).astype(o_ref.dtype)


def _pick_tm(n, target):
    """Largest power-of-two row tile <= target dividing n; prefer >=2 grid steps
    so the single grid axis still splits across v7x's two TensorCores."""
    cands = [t for t in (2048, 1024, 512, 256, 128, 64, 32, 16, 8)
             if t <= target and n % t == 0]
    if not cands:
        return n
    tm = cands[0]
    if n // tm < 2 and len(cands) > 1 and n // cands[1] >= 2:
        tm = cands[1]
    return tm


def patch_embedding(x, weight, bias, patch_size, *, tm_target=1024):
    """x: (B, in_ch, H, W); weight: (num_feat, in_ch, p, p) [PyTorch Conv2d layout];
    bias: (num_feat,). Returns (B, H//p, W//p, num_feat)."""
    B, C, H, W = x.shape
    F = weight.shape[0]
    p = patch_size
    assert H % p == 0 and W % p == 0, "spatial dims must be divisible by patch"
    Hp, Wp = H // p, W // p
    N = B * Hp * Wp
    K = C * p * p

    # im2col on the (smaller) input stream. Patch element order (c, kh, kw)
    # matches the flattened Conv2d weight layout.
    x2 = x.reshape(B, C, Hp, p, Wp, p)
    x2 = jnp.transpose(x2, (0, 2, 4, 1, 3, 5)).reshape(N, K)
    wt = weight.reshape(F, K).T            # (K, F)
    b2 = bias.reshape(1, F)

    tm = _pick_tm(N, tm_target)
    grid = (N // tm,)

    cost = pl.CostEstimate(
        flops=2 * N * K * F,
        transcendentals=0,
        bytes_accessed=4 * (N * K + K * F + F + N * F),
    )

    y = pl.pallas_call(
        _patch_embed_kernel,
        out_shape=jax.ShapeDtypeStruct((N, F), x.dtype),
        grid_spec=pltpu.PrefetchScalarGridSpec(
            num_scalar_prefetch=0,
            grid=grid,
            in_specs=[
                pl.BlockSpec((tm, K), lambda i: (i, 0)),   # patch rows (tiled)
                pl.BlockSpec((K, F), lambda i: (0, 0)),    # weight (resident)
                pl.BlockSpec((1, F), lambda i: (0, 0)),    # bias   (resident)
            ],
            out_specs=pl.BlockSpec((tm, F), lambda i: (i, 0)),
        ),
        compiler_params=pltpu.CompilerParams(
            dimension_semantics=("parallel",)),
        cost_estimate=cost,
    )(x2, wt, b2)

    # Zero-copy: rows are already ordered (b, hp, wp) with channels last.
    return y.reshape(B, Hp, Wp, F)


def _reference(x, weight, bias, patch_size):
    """Pure-JAX reference mirroring the PyTorch forward exactly."""
    y = lax.conv_general_dilated(
        x, weight,
        window_strides=(patch_size, patch_size),
        padding="VALID",
        dimension_numbers=("NCHW", "OIHW", "NCHW"),
        precision=lax.Precision.HIGHEST,
    )
    y = y + bias.reshape(1, -1, 1, 1)
    return jnp.transpose(y, (0, 2, 3, 1))


if __name__ == "__main__":
    B, C, H, W = 2, 3, 64, 64
    patch = 4
    num_feat = 128            # lane-dense output (multiple of 128)

    key = jax.random.PRNGKey(0)
    kx, kw, kb = jax.random.split(key, 3)
    x = jax.random.normal(kx, (B, C, H, W), dtype=jnp.float32)
    weight = jax.random.normal(kw, (num_feat, C, patch, patch),
                               dtype=jnp.float32) * 0.02
    bias = jax.random.normal(kb, (num_feat,), dtype=jnp.float32) * 0.02

    out = patch_embedding(x, weight, bias, patch)
    out = jax.block_until_ready(out)

    ref = _reference(x, weight, bias, patch)
    assert out.shape == (B, H // patch, W // patch, num_feat), out.shape
    assert jnp.allclose(out, ref, atol=1e-3, rtol=1e-3), float(
        jnp.max(jnp.abs(out - ref)))

    print("KERNEL_OK")
</pallas_src>

<mosaic_0001>
module attributes {stable_mosaic.version = 11 : i64} {
  func.func @_patch_embed_kernel(%arg0: i32, %arg1: memref<256x48xf32, #tpu.memory_space<vmem>>, %arg2: memref<48x128xf32, #tpu.memory_space<vmem>>, %arg3: memref<1x128xf32, #tpu.memory_space<vmem>>, %arg4: memref<256x128xf32, #tpu.memory_space<vmem>>) attributes {dimension_semantics = [#tpu.dimension_semantics<parallel>], iteration_bounds = array<i64: 2>, scalar_prefetch = 0 : i64, scratch_operands = 0 : i64, tpu.core_type = #tpu.core_type<tc>, window_params = [{transform_indices = @transform_0, window_bounds = array<i64: 256, 48>}, {pipeline_mode = #tpu.pipeline_mode<synchronous>, transform_indices = @transform_1, window_bounds = array<i64: 48, 128>}, {pipeline_mode = #tpu.pipeline_mode<synchronous>, transform_indices = @transform_2, window_bounds = array<i64: 1, 128>}, {transform_indices = @transform_3, window_bounds = array<i64: 256, 128>}]} {
    %c0 = arith.constant 0 : index
    %c0_0 = arith.constant 0 : index
    %0 = vector.load %arg1[%c0, %c0_0] : memref<256x48xf32, #tpu.memory_space<vmem>>, vector<256x48xf32>
    %c0_1 = arith.constant 0 : index
    %c0_2 = arith.constant 0 : index
    %1 = vector.load %arg2[%c0_1, %c0_2] : memref<48x128xf32, #tpu.memory_space<vmem>>, vector<48x128xf32>
    %cst = arith.constant dense<0.000000e+00> : vector<256x128xf32>
    %2 = tpu.matmul %0, %1, %cst {dimension_numbers = #tpu.dot_dimension_numbers<[1], [0], [0], [1], [0, 0, 1, 1], [], []>} : vector<256x48xf32>, vector<48x128xf32>, vector<256x128xf32> -> vector<256x128xf32>
    %c0_3 = arith.constant 0 : index
    %c0_4 = arith.constant 0 : index
    %3 = vector.load %arg3[%c0_3, %c0_4] : memref<1x128xf32, #tpu.memory_space<vmem>>, vector<1x128xf32>
    %4 = vector.broadcast %3 : vector<1x128xf32> to vector<256x128xf32>
    %5 = arith.addf %2, %4 : vector<256x128xf32>
    %c0_5 = arith.constant 0 : index
    %c0_6 = arith.constant 0 : index
    %6 = vector.load %arg4[%c0_5, %c0_6] : memref<256x128xf32, #tpu.memory_space<vmem>>, vector<256x128xf32>
    tpu.vector_store %arg4[%c0_5, %c0_6], %5 {strides = array<i32>} : memref<256x128xf32, #tpu.memory_space<vmem>>, vector<256x128xf32>,
    return
  }
  func.func @transform_0(%arg0: i32) -> (i32, i32) {
    %c0_i32 = arith.constant 0 : i32
    %c0_i32_0 = arith.constant 0 : i32
    return %arg0, %c0_i32 : i32, i32
  }
  func.func @transform_1(%arg0: i32) -> (i32, i32) {
    %c0_i32 = arith.constant 0 : i32
    %c0_i32_0 = arith.constant 0 : i32
    %c0_i32_1 = arith.constant 0 : i32
    return %c0_i32, %c0_i32_0 : i32, i32
  }
  func.func @transform_2(%arg0: i32) -> (i32, i32) {
    %c0_i32 = arith.constant 0 : i32
    %c0_i32_0 = arith.constant 0 : i32
    %c0_i32_1 = arith.constant 0 : i32
    return %c0_i32, %c0_i32_0 : i32, i32
  }
  func.func @transform_3(%arg0: i32) -> (i32, i32) {
    %c0_i32 = arith.constant 0 : i32
    %c0_i32_0 = arith.constant 0 : i32
    return %arg0, %c0_i32 : i32, i32
  }
}

</mosaic_0001>

<bundles_post_ra>
// kernel: tpu_custom_call.1
= control target key start
LH: loop header
LB: loop body
LE: loop exit
PB: predicated region body
PF: predicated region fallthrough
CT: control target
= control target key end

     0   :  { %8 = vsyncpa [#allocation3], 0  ;;  %s1199_s0 = inlined_call_operand.vmem [shape: f32[512,48], index: 0, kind: input, shape index: {}]   ;;  %s1200_s1 = inlined_call_operand.vmem [shape: f32[48,128], index: 1, kind: input, shape index: {}]   ;;  %s1201_s2 = inlined_call_operand.vmem [shape: f32[1,128], index: 2, kind: input, shape index: {}]   ;;  %s1202_s3 = inlined_call_operand.hbm [shape: f32[512,128], index: 3, kind: output, shape index: {}]  }
   0x1   :  { %10 = vsyncpa [#allocation3 + $0x1], 0  ;;  %s937_s12 = smov 0   ;;  %s939_s13 = smov 0  }
   0x2   :  { %s941_s14 = smov 0   ;;  %s943_s15 = smov 0  }
   0x3 LB: > { %s958_s16 = sadd.s32 4294967295, %s912_s15   ;;  %s647_s17 = sadd.s32 4294967294, %s912_s15   ;;  %s912_s15 = sphi %s943_s15, %s1208_s15   ;;  %s908_s14 = sphi %s941_s14, %s1207_s14   ;;  %s904_s13 = sphi %s939_s13, %s1206_s13   ;;  %s900_s12 = sphi %s937_s12, %s1205_s12  }
   0x4   : > { %s962_s18 = sadd.s32 1, %s912_s15   ;;  %s91_s19 = sadd.s32 1, %s908_s14 }
   0x5   : > { %s88_s20 = ssub.s32 %s912_s15, %s962_s18  ;;  %p101_p0 = scmp.ne.s32.totalorder %s908_s14, %s904_s13 }
   0x6   : > { %p89_p1 = scmp.eq.s32.totalorder %s88_s20, 0  ;;  %p102_p2 = scmp.eq.s32.totalorder %s958_s16, 1 }
   0x7   : > { %p107_p3 = scmp.ne.s32.totalorder %s904_s13, %s900_s12  ;;  %p108_p4 = scmp.eq.s32.totalorder %s647_s17, 1 }
   0x8   : > { %s973_s21 = scalar_select %p89_p1, %s908_s14, %s91_s19  }
   0x9   : > { %p975_p5 = por %p102_p2, %p101_p0  ;;  %p979_p6 = por %p108_p4, %p107_p3 }
   0xa   : > { %p650_p7 = scmp.ge.s32.totalorder %s912_s15, 1  ;;  %p141_p8 = scmp.lt.s32.totalorder %s912_s15, 3 }
   0xc   : > { %p142_p9 = pnand %p650_p7, %p141_p8 }
   0xd   : > { %v204_v0 = vld [vmem:[%s1200_s1] sm:$0xff] (!%p142_p9)  ;;  %v205_v1 = vld [vmem:[%s1200_s1 + $0x8] sm:$0xff] (!%p142_p9)  ;;  %v206_v2 = vld [vmem:[%s1200_s1 + $0x10] sm:$0xff] (!%p142_p9)  ;;  %s652_s30 = sshll.u32 (!%p142_p9), %s958_s16, 5  ;;  %vm217_vm0 = vcmask (!%p142_p9), 392192   ;;  %s162_s20 = sand.u32 (!%p142_p9), 1, %s904_s13  }
   0xe   : > { %145 = sbr.rel (%p142_p9) target bundleno = 287 (0x11f), region = 32  ;;  %v791_v3 = vpack.c.bf16 (!%p142_p9), %v205_v1, %v204_v0  ;;  %v207_v4 = vld [vmem:[%s1200_s1 + $0x18] sm:$0xff] (!%p142_p9)  ;;  %p166_p10 = scmp.lt.s32.totalorder (!%p142_p9), %s652_s30, 63  ;;  %v208_v6 = vld [vmem:[%s1200_s1 + $0x20] sm:$0xff] (!%p142_p9)  ;;  %v209_v7 = vld [vmem:[%s1200_s1 + $0x28] sm:$0xff] (!%p142_p9) }
   0xf   : > { %v795_v5 = vpack.c.bf16 (!%p142_p9), %v207_v4, %v206_v2  ;;  %v799_v8 = vpack.c.bf16 (!%p142_p9), %v209_v7, %v208_v6  ;;  %s651_s24 = sshll.u32 (!%p142_p9), %s162_s20, 8  ;;  %v1079_v41 = vld [vmem:[%s1201_s2] ss:$0 sm:$0xff] (!%p142_p9)  ;;  %s692_s28 = sshll.u32 (!%p142_p9), %s958_s16, 12 }
  0x10   : > { %792 = vmatprep.subr.bf16.mxu0 (!%p142_p9), %v791_v3  ;;  %803 = vmatprep.subr.bf16.mxu1 (!%p142_p9), %v791_v3  ;;  %s1085_s27 = scalar_lea.vmem (!%p142_p9), [#allocation2], %s651_s24  ;;  %s1146_s4 = scalar_lea.hbm (!%p142_p9), %s1202_s3, %s692_s28 }
  0x11   : > { %794 = vmatpush3.bf16.msra.mxu0 (!%p142_p9), %v791_v3  ;;  %806 = vmatpush3.bf16.msra.mxu1 (!%p142_p9), %v791_v3  ;;  %s585_s29 = sshll.u32 (!%p142_p9), %s1085_s27, 4  ;;  %s1158_s5 = scalar_lea.sflag (!%p142_p9), [#allocation3], %s162_s20  ;;  %s1148_s29 = int_to_ptr.vmem [resolvable:$true] %s585_s29 }
  0x12   : > { %796 = vmatprep.subr.bf16.mxu0 (!%p142_p9), %v795_v5  ;;  %804 = vmatprep.subr.bf16.mxu1 (!%p142_p9), %v795_v5  ;;  %s850_s6 = scalar_lea.vmem (!%p142_p9), %s1148_s29, 4096  ;;  %s914_s7 = smov (!%p142_p9), [#allocation2]  }
  0x13   : > { %p851_p11 = scmp.ne.s32.totalorder (!%p142_p9), %s1148_s29, %s850_s6  ;;  %s854_s8 = sshll.u32 (!%p142_p9), %s914_s7, 4  ;;  %s855_s8 = int_to_ptr.vmem [resolvable:$false] %s854_s8 }
  0x14   : > { %s856_s9 = scalar_lea.vmem (!%p142_p9), %s855_s8, 8192  ;;  %p857_p0 = scmp.lt.s32.totalorder (!%p142_p9), %s1148_s29, %s855_s8 }
  0x15   : > { %s1210_s30 = smov (!%p166_p10, %s652_s30), 63  ;;  %798 = vmatpush3.bf16.msra.mxu0 %v795_v5  ;;  %807 = vmatpush3.bf16.msra.mxu1 %v795_v5  ;;  %p852_p12 = pnand %p851_p11, %p975_p5 }
  0x16   : > { %s653_s10 = sshll.u32 %s1210_s30, 3  ;;  %800 = vmatprep.subr.bf16.mxu0 %v799_v8  ;;  %805 = vmatprep.subr.bf16.mxu1 %v799_v8  ;;  %p858_p1 = scmp.lt.s32.totalorder %s856_s9, %s850_s6 }
  0x17   : > { %s1007_s19 = scalar_lea.vmem %s1199_s0, %s653_s10  ;;  %p853_p13 = pneg %p852_p12 }
  0x18   : > { %v172_v9 = vld [vmem:[%s1007_s19] sm:$0xff]  ;;  %v173_v11 = vld [vmem:[%s1007_s19 + $0x8] sm:$0xff]  ;;  %v174_v13 = vld [vmem:[%s1007_s19 + $0x10] sm:$0xff]  ;;  %p859_p2 = por %p858_p1, %p857_p0 }
  0x19   : > { %v188_v10 = vld [vmem:[%s1007_s19 + $0x80] sm:$0xff]  ;;  %743 = vmatprep.mubr.msk.f32.mxu0 %vm217_vm0, %v172_v9  ;;  %802 = vmatpush3.bf16.msra.mxu0 %v799_v8  ;;  %v189_v12 = vld [vmem:[%s1007_s19 + $0x88] sm:$0xff]  ;;  %v190_v14 = vld [vmem:[%s1007_s19 + $0x90] sm:$0xff] }
  0x1a   : > { %767 = vmatprep.mubr.msk.f32.mxu1 %vm217_vm0, %v188_v10  ;;  %808 = vmatpush3.bf16.msra.mxu1 %v799_v8  ;;  %v175_v15 = vld [vmem:[%s1007_s19 + $0x18] sm:$0xff]  ;;  %v176_v17 = vld [vmem:[%s1007_s19 + $0x20] sm:$0xff]  ;;  %v177_v19 = vld [vmem:[%s1007_s19 + $0x28] sm:$0xff]  ;;  %p860_p3 = pnand %p859_p2, %p853_p13 }
  0x1b   : > { %v191_v16 = vld [vmem:[%s1007_s19 + $0x98] sm:$0xff]  ;;  %v192_v18 = vld [vmem:[%s1007_s19 + $0xa0] sm:$0xff]  ;;  %v193_v20 = vld [vmem:[%s1007_s19 + $0xa8] sm:$0xff] }
  0x1c   : > { %744 = vmatmul.mubr.msk.f32.vlgmr.msra.gmra.mrb[0].mxu0 %vm217_vm0, %v173_v11  ;;  %v178_v21 = vld [vmem:[%s1007_s19 + $0x30] sm:$0xff]  ;;  %v179_v23 = vld [vmem:[%s1007_s19 + $0x38] sm:$0xff]  ;;  %v180_v25 = vld [vmem:[%s1007_s19 + $0x40] sm:$0xff] }
  0x1d   : > { %768 = vmatmul.mubr.msk.f32.vlgmr.msra.gmra.mrb[0].mxu1 %vm217_vm0, %v189_v12  ;;  %746 = vmatprep.mubr.msk.f32.mxu0 %vm217_vm0, %v174_v13  ;;  %v194_v22 = vld [vmem:[%s1007_s19 + $0xb0] sm:$0xff]  ;;  %v195_v24 = vld [vmem:[%s1007_s19 + $0xb8] sm:$0xff]  ;;  %v196_v26 = vld [vmem:[%s1007_s19 + $0xc0] sm:$0xff] }
  0x1e   : > { %770 = vmatprep.mubr.msk.f32.mxu1 %vm217_vm0, %v190_v14  ;;  %v181_v27 = vld [vmem:[%s1007_s19 + $0x48] sm:$0xff]  ;;  %v182_v29 = vld [vmem:[%s1007_s19 + $0x50] sm:$0xff]  ;;  %v183_v31 = vld [vmem:[%s1007_s19 + $0x58] sm:$0xff] }
  0x1f   : > { %v197_v28 = vld [vmem:[%s1007_s19 + $0xc8] sm:$0xff]  ;;  %v198_v30 = vld [vmem:[%s1007_s19 + $0xd0] sm:$0xff]  ;;  %v199_v32 = vld [vmem:[%s1007_s19 + $0xd8] sm:$0xff] }
  0x20   : > { %747 = vmatmul.mubr.msk.f32.gmra.mrb[2].mxu0 %vm217_vm0, %v175_v15  ;;  %v184_v33 = vld [vmem:[%s1007_s19 + $0x60] sm:$0xff]  ;;  %v185_v35 = vld [vmem:[%s1007_s19 + $0x68] sm:$0xff]  ;;  %v186_v37 = vld [vmem:[%s1007_s19 + $0x70] sm:$0xff] }
  0x21   : > { %771 = vmatmul.mubr.msk.f32.gmra.mrb[2].mxu1 %vm217_vm0, %v191_v16  ;;  %749 = vmatprep.mubr.msk.f32.mxu0 %vm217_vm0, %v176_v17  ;;  %v200_v34 = vld [vmem:[%s1007_s19 + $0xe0] sm:$0xff]  ;;  %v201_v36 = vld [vmem:[%s1007_s19 + $0xe8] sm:$0xff]  ;;  %v202_v38 = vld [vmem:[%s1007_s19 + $0xf0] sm:$0xff] }
  0x22   : > { %773 = vmatprep.mubr.msk.f32.mxu1 %vm217_vm0, %v192_v18  ;;  %v187_v39 = vld [vmem:[%s1007_s19 + $0x78] sm:$0xff] }
  0x23   : > { %v203_v40 = vld [vmem:[%s1007_s19 + $0xf8] sm:$0xff] }
  0x24   : > { %750 = vmatmul.mubr.msk.f32.gmra.mrb[4].mxu0 %vm217_vm0, %v177_v19 }
  0x25   : > { %774 = vmatmul.mubr.msk.f32.gmra.mrb[4].mxu1 %vm217_vm0, %v193_v20  ;;  %752 = vmatprep.mubr.msk.f32.mxu0 %vm217_vm0, %v178_v21 }
  0x26   : > { %776 = vmatprep.mubr.msk.f32.mxu1 %vm217_vm0, %v194_v22 }
  0x28   : > { %753 = vmatmul.mubr.msk.f32.gmra.mrb[6].mxu0 %vm217_vm0, %v179_v23 }
  0x29   : > { %777 = vmatmul.mubr.msk.f32.gmra.mrb[6].mxu1 %vm217_vm0, %v195_v24  ;;  %755 = vmatprep.mubr.msk.f32.mxu0 %vm217_vm0, %v180_v25 }
  0x2a   : > { %779 = vmatprep.mubr.msk.f32.mxu1 %vm217_vm0, %v196_v26 }
  0x2c   : > { %756 = vmatmul.mubr.msk.f32.gmra.mrb[8].mxu0 %vm217_vm0, %v181_v27 }
  0x2d   : > { %780 = vmatmul.mubr.msk.f32.gmra.mrb[8].mxu1 %vm217_vm0, %v197_v28  ;;  %758 = vmatprep.mubr.msk.f32.mxu0 %vm217_vm0, %v182_v29 }
  0x2e   : > { %782 = vmatprep.mubr.msk.f32.mxu1 %vm217_vm0, %v198_v30 }
  0x30   : > { %759 = vmatmul.mubr.msk.f32.gmra.mrb[10].mxu0 %vm217_vm0, %v183_v31 }
  0x31   : > { %783 = vmatmul.mubr.msk.f32.gmra.mrb[10].mxu1 %vm217_vm0, %v199_v32  ;;  %761 = vmatprep.mubr.msk.f32.mxu0 %vm217_vm0, %v184_v33 }
  0x32   : > { %785 = vmatprep.mubr.msk.f32.mxu1 %vm217_vm0, %v200_v34 }
  0x34   : > { %762 = vmatmul.mubr.msk.f32.gmra.mrb[12].mxu0 %vm217_vm0, %v185_v35 }
  0x35   : > { %786 = vmatmul.mubr.msk.f32.gmra.mrb[12].mxu1 %vm217_vm0, %v201_v36  ;;  %764 = vmatprep.mubr.msk.f32.mxu0 %vm217_vm0, %v186_v37 }
  0x36   : > { %788 = vmatprep.mubr.msk.f32.mxu1 %vm217_vm0, %v202_v38 }
  0x38   : > { %765 = vmatmul.mubr.msk.f32.gmra.mrb[14].mxu0 %vm217_vm0, %v187_v39 }
  0x39   : > { %789 = vmatmul.mubr.msk.f32.gmra.mrb[14].mxu1 %vm217_vm0, %v203_v40 }
  0xef   : > { %v745_v42 = vpop.f32.mrb[0].mxu0 }
  0xf0   : > { %v769_v43 = vpop.f32.mrb[0].mxu1  ;;  %v386_v44 = vadd.f32 %v745_v42, %v1079_v41  ;;  %v380_v46 = vpop.f32.mrb[1].mxu0 }
  0xf1   : > { %v466_v45 = vadd.f32 %v769_v43, %v1079_v41  ;;  %v460_v47 = vpop.f32.mrb[1].mxu1  ;;  %v381_v48 = vadd.f32 %v1079_v41, %v380_v46 }
  0xf2   : > { %v461_v49 = vadd.f32 %v1079_v41, %v460_v47  ;;  %540 = vst [vmem:[%s1085_s27 + $0x8] sm:$0xff] %v386_v44 }
  0xf3   : > { %556 = vst [vmem:[%s1085_s27 + $0x88] sm:$0xff] %v466_v45  ;;  %539 = vst [vmem:[%s1085_s27] sm:$0xff] %v381_v48  ;;  %v748_v50 = vpop.f32.mrb[2].mxu0 }
  0xf4   : > { %555 = vst [vmem:[%s1085_s27 + $0x80] sm:$0xff] %v461_v49  ;;  %v772_v51 = vpop.f32.mrb[2].mxu1  ;;  %v396_v52 = vadd.f32 %v748_v50, %v1079_v41  ;;  %v390_v54 = vpop.f32.mrb[3].mxu0 }
  0xf5   : > { %v476_v53 = vadd.f32 %v772_v51, %v1079_v41  ;;  %v470_v55 = vpop.f32.mrb[3].mxu1  ;;  %v391_v56 = vadd.f32 %v1079_v41, %v390_v54 }
  0xf6   : > { %v471_v57 = vadd.f32 %v1079_v41, %v470_v55  ;;  %542 = vst [vmem:[%s1085_s27 + $0x18] sm:$0xff] %v396_v52 }
  0xf7   : > { %558 = vst [vmem:[%s1085_s27 + $0x98] sm:$0xff] %v476_v53  ;;  %541 = vst [vmem:[%s1085_s27 + $0x10] sm:$0xff] %v391_v56  ;;  %v751_v58 = vpop.f32.mrb[4].mxu0 }
  0xf8   : > { %557 = vst [vmem:[%s1085_s27 + $0x90] sm:$0xff] %v471_v57  ;;  %v775_v59 = vpop.f32.mrb[4].mxu1  ;;  %v406_v60 = vadd.f32 %v751_v58, %v1079_v41  ;;  %v400_v62 = vpop.f32.mrb[5].mxu0 }
  0xf9   : > { %v486_v61 = vadd.f32 %v775_v59, %v1079_v41  ;;  %v480_v63 = vpop.f32.mrb[5].mxu1  ;;  %v401_v0 = vadd.f32 %v1079_v41, %v400_v62 }
  0xfa   : > { %v481_v1 = vadd.f32 %v1079_v41, %v480_v63  ;;  %544 = vst [vmem:[%s1085_s27 + $0x28] sm:$0xff] %v406_v60 }
  0xfb   : > { %560 = vst [vmem:[%s1085_s27 + $0xa8] sm:$0xff] %v486_v61  ;;  %543 = vst [vmem:[%s1085_s27 + $0x20] sm:$0xff] %v401_v0  ;;  %v754_v2 = vpop.f32.mrb[6].mxu0 }
  0xfc   : > { %559 = vst [vmem:[%s1085_s27 + $0xa0] sm:$0xff] %v481_v1  ;;  %v778_v3 = vpop.f32.mrb[6].mxu1  ;;  %v416_v4 = vadd.f32 %v754_v2, %v1079_v41  ;;  %v410_v6 = vpop.f32.mrb[7].mxu0 }
  0xfd   : > { %v496_v5 = vadd.f32 %v778_v3, %v1079_v41  ;;  %v490_v7 = vpop.f32.mrb[7].mxu1  ;;  %v411_v8 = vadd.f32 %v1079_v41, %v410_v6 }
  0xfe   : > { %v491_v9 = vadd.f32 %v1079_v41, %v490_v7  ;;  %546 = vst [vmem:[%s1085_s27 + $0x38] sm:$0xff] %v416_v4 }
  0xff   : > { %562 = vst [vmem:[%s1085_s27 + $0xb8] sm:$0xff] %v496_v5  ;;  %545 = vst [vmem:[%s1085_s27 + $0x30] sm:$0xff] %v411_v8  ;;  %v757_v10 = vpop.f32.mrb[8].mxu0 }
 0x100   : > { %561 = vst [vmem:[%s1085_s27 + $0xb0] sm:$0xff] %v491_v9  ;;  %v781_v11 = vpop.f32.mrb[8].mxu1  ;;  %v426_v12 = vadd.f32 %v757_v10, %v1079_v41  ;;  %v420_v14 = vpop.f32.mrb[9].mxu0 }
 0x101   : > { %v506_v13 = vadd.f32 %v781_v11, %v1079_v41  ;;  %v500_v15 = vpop.f32.mrb[9].mxu1  ;;  %v421_v16 = vadd.f32 %v1079_v41, %v420_v14 }
 0x102   : > { %v501_v17 = vadd.f32 %v1079_v41, %v500_v15  ;;  %548 = vst [vmem:[%s1085_s27 + $0x48] sm:$0xff] %v426_v12 }
 0x103   : > { %564 = vst [vmem:[%s1085_s27 + $0xc8] sm:$0xff] %v506_v13  ;;  %547 = vst [vmem:[%s1085_s27 + $0x40] sm:$0xff] %v421_v16  ;;  %v760_v18 = vpop.f32.mrb[10].mxu0 }
 0x104   : > { %563 = vst [vmem:[%s1085_s27 + $0xc0] sm:$0xff] %v501_v17  ;;  %v784_v19 = vpop.f32.mrb[10].mxu1  ;;  %v436_v20 = vadd.f32 %v760_v18, %v1079_v41  ;;  %v430_v22 = vpop.f32.mrb[11].mxu0 }
 0x105   : > { %v516_v21 = vadd.f32 %v784_v19, %v1079_v41  ;;  %v510_v23 = vpop.f32.mrb[11].mxu1  ;;  %v431_v24 = vadd.f32 %v1079_v41, %v430_v22 }
 0x106   : > { %v511_v25 = vadd.f32 %v1079_v41, %v510_v23  ;;  %550 = vst [vmem:[%s1085_s27 + $0x58] sm:$0xff] %v436_v20 }
 0x107   : > { %566 = vst [vmem:[%s1085_s27 + $0xd8] sm:$0xff] %v516_v21  ;;  %549 = vst [vmem:[%s1085_s27 + $0x50] sm:$0xff] %v431_v24  ;;  %v763_v26 = vpop.f32.mrb[12].mxu0 }
 0x108   : > { %565 = vst [vmem:[%s1085_s27 + $0xd0] sm:$0xff] %v511_v25  ;;  %v787_v27 = vpop.f32.mrb[12].mxu1  ;;  %v446_v28 = vadd.f32 %v763_v26, %v1079_v41  ;;  %v440_v30 = vpop.f32.mrb[13].mxu0 }
 0x109   : > { %v526_v29 = vadd.f32 %v787_v27, %v1079_v41  ;;  %v520_v31 = vpop.f32.mrb[13].mxu1  ;;  %v441_v32 = vadd.f32 %v1079_v41, %v440_v30 }
 0x10a   : > { %v521_v33 = vadd.f32 %v1079_v41, %v520_v31  ;;  %552 = vst [vmem:[%s1085_s27 + $0x68] sm:$0xff] %v446_v28 }
 0x10b   : > { %568 = vst [vmem:[%s1085_s27 + $0xe8] sm:$0xff] %v526_v29  ;;  %551 = vst [vmem:[%s1085_s27 + $0x60] sm:$0xff] %v441_v32  ;;  %v766_v34 = vpop.f32.mrb[14].mxu0 }
 0x10c   : > { %567 = vst [vmem:[%s1085_s27 + $0xe0] sm:$0xff] %v521_v33  ;;  %v790_v35 = vpop.f32.mrb[14].mxu1  ;;  %v456_v36 = vadd.f32 %v766_v34, %v1079_v41  ;;  %v450_v38 = vpop.f32.mrb[15].mxu0 }
 0x10d   : > { %v536_v37 = vadd.f32 %v790_v35, %v1079_v41  ;;  %v530_v39 = vpop.f32.mrb[15].mxu1  ;;  %v451_v40 = vadd.f32 %v1079_v41, %v450_v38 }
 0x10e   : > { %v531_v42 = vadd.f32 %v1079_v41, %v530_v39  ;;  %554 = vst [vmem:[%s1085_s27 + $0x78] sm:$0xff] %v456_v36 }
 0x10f   : > { %570 = vst [vmem:[%s1085_s27 + $0xf8] sm:$0xff] %v536_v37  ;;  %553 = vst [vmem:[%s1085_s27 + $0x70] sm:$0xff] %v451_v40 }
 0x110   : > { %569 = vst [vmem:[%s1085_s27 + $0xf0] sm:$0xff] %v531_v42 }
 0x111   : > { %863 = shalt.err (!%p860_p3)
}
 0x112   : > { %s864_s10 = scalar_lea.hbm %s1146_s4, 4096  ;;  %s868_s19 = scalar_lea.hbm %s1202_s3, 8192 }
 0x113   : > { %p865_p4 = scmp.ne.s32.totalorder %s1146_s4, %s864_s10  ;;  %p869_p9 = scmp.lt.u32.totalorder %s1146_s4, %s1202_s3 }
 0x114   : > { %p870_p10 = scmp.lt.u32.totalorder %s868_s19, %s864_s10  ;;  %p872_p12 = scmp.lt.u32.totalorder %s864_s10, %s1146_s4 }
 0x115   : > { %p866_p7 = pnand %p865_p4, %p975_p5 }
 0x116   : > { %p871_p11 = por %p870_p10, %p869_p9 }
 0x117   : > { %p867_p8 = pneg %p866_p7 }
 0x118   : > { %p873_p13 = por %p872_p12, %p871_p11 }
 0x11a   : > { %p874_p0 = pnand %p873_p13, %p867_p8 }
 0x11c   : > { %877 = shalt.err (!%p874_p0)
}
 0x11d   : > { %s915_s25 = smov 128   ;;  %s916_s26 = smov 8  }
 0x11e   : > { %809 = dma.vmem_to_hbm [thread:$0]  (%p975_p5), %s1148_s29, 4096, %s1146_s4, %s1158_s5, %s915_s25, %s915_s25, %s916_s26  }
 0x11f PF: > { %p815_p1 = scmp.ge.s32.totalorder %s912_s15, 2  ;;  %s600_s27 = sand.u32 1, %s900_s12  }
 0x120   : > { %s601_s28 = scalar_lea.sflag [#allocation3], %s600_s27 }
 0x121   : > { %p812_p2 = pnand %p815_p1, %p979_p6 }
 0x123   : > { %895 = dma.done.wait (!%p812_p2), %s601_s28, 4096  }
 0x124   : > { %897 = vsyncadd (!%p812_p2), %s601_s28, 4294963200  ;;  %p13_p3 = scmp.ge.s32.totalorder %s962_s18, 4   ;;  %s1205_s12 = smov %s904_s13 }
 0x125   : > { %s1206_s13 = smov %s908_s14  ;;  %s1207_s14 = smov %s973_s21 }
 0x126   : > { %s1208_s15 = smov %s962_s18  ;;  %15 = sbr.rel (!%p13_p3) target bundleno = 3 (0x3), region = 67 }
 0x12d   :  { %606 = vsyncpa [#allocation3], 1 }
 0x12e   :  { %608 = vsyncpa [#allocation3 + $0x1], 1 }

</bundles_post_ra>
